<compile_context>
chip_gen: v6e
topology: v6e:2x2x1
jax: 0.10.0
libtpu: 0.0.40
codegen_flags: <defaults>
</compile_context>

<pallas_src>
import functools

import jax
import jax.numpy as jnp
from jax.experimental import pallas as pl
from jax.experimental.pallas import tpu as pltpu


# ---------------------------------------------------------------------------
# helpers
# ---------------------------------------------------------------------------
def _cdiv(a, b):
    return -(-a // b)


def _ceil_to(a, b):
    return _cdiv(a, b) * b


def _vmem_bytes(block_shape, itemsize):
    # Approximate VMEM footprint of one block ((8,128)-padded last two dims).
    dims = list(block_shape)
    dims[-1] = _ceil_to(dims[-1], 128)
    if len(dims) >= 2:
        dims[-2] = _ceil_to(dims[-2], 8)
    n = 1
    for d in dims:
        n *= d
    return n * itemsize


def _build_prompt(pad_up, pad_down, pad_left, pad_right, dtype):
    # pad_up/down: (1, C, ps, W); pad_left/right: (1, C, base, ps)
    C, ps, W = pad_up.shape[1], pad_up.shape[2], pad_up.shape[3]
    base = W - 2 * ps
    zeros = jnp.zeros((1, C, base, base), dtype)
    mid = jnp.concatenate(
        [pad_left.astype(dtype), zeros, pad_right.astype(dtype)], axis=3)
    prompt = jnp.concatenate(
        [pad_up.astype(dtype), mid, pad_down.astype(dtype)], axis=2)
    return prompt[0]  # (C, H, W)


# ---------------------------------------------------------------------------
# Kernel 1: full-image streaming add (lane-dense)
# ---------------------------------------------------------------------------
def _add_prompt_kernel(x_ref, prompt_ref, o_ref):
    # Single full-tile VPU add; the kernel is HBM-bandwidth bound.
    o_ref[...] = x_ref[...] + prompt_ref[...]


def pad_prompter_forward(x, pad_up, pad_down, pad_left, pad_right,
                         *, donate_x=False, block_budget_bytes=None):
    B, C, H, W = x.shape
    ps = pad_up.shape[2]
    base = H - 2 * ps
    assert H == W and base > 0
    assert pad_up.shape == (1, C, ps, W)
    assert pad_down.shape == (1, C, ps, W)
    assert pad_left.shape == (1, C, base, ps)
    assert pad_right.shape == (1, C, base, ps)

    dt = x.dtype
    itemsize = jnp.dtype(dt).itemsize
    prompt = _build_prompt(pad_up, pad_down, pad_left, pad_right, dt)  # (C,H,W)
    F = C * H * W

    # Per-block budget: ~8 MiB amortizes the ~0.35us/step overhead on all
    # generations while keeping 4*block + 2*prompt well under v7x's 64 MiB.
    budget = block_budget_bytes if block_budget_bytes else 8 * 1024 * 1024
    aliases = {0: 0} if donate_x else {}

    if F % 128 == 0:
        # Lane-dense path: each image becomes an (R, 128) slab -> unmasked vst.
        R = F // 128
        img_bytes = R * 128 * itemsize
        if img_bytes <= budget:
            bt = max(1, min(B, budget // img_bytes))
            if B >= 2:
                # Guarantee >= 2 batch grid steps so v7x's 2nd TC gets work
                # (free on v5e/v6e which have a single TC).
                bt = min(bt, _cdiv(B, 2))
            rt = R
        else:
            # Single image exceeds the budget: tile the flattened slab over R.
            bt = 1
            rt = min(R, max(8, (budget // (128 * itemsize)) // 8 * 8))
        grid = (_cdiv(B, bt), _cdiv(R, rt))
        x_in = x.reshape(B, R, 128)
        p_in = prompt.reshape(R, 128)
        x_block = (bt, rt, 128)
        p_block = (rt, 128)
        in_specs = [
            pl.BlockSpec(x_block, lambda i, j: (i, j, 0)),
            # Batch-invariant index_map: DMA'd once per R-tile, VMEM resident.
            pl.BlockSpec(p_block, lambda i, j: (j, 0)),
        ]
        out_spec = pl.BlockSpec(x_block, lambda i, j: (i, j, 0))
        out_shape = jax.ShapeDtypeStruct((B, R, 128), dt)
    else:
        # Fallback: flatten to (B, F) and tile F in multiples of 128 so only
        # the last partial 128-lane vreg per sublane row uses a masked store.
        # (bt must be a multiple of 8 or equal B to satisfy the (8,128) rule.)
        row = F * itemsize
        if B * row <= budget:
            bt, ft = B, F
        elif (budget // row) >= 8 and B >= 8:
            bt = min((budget // row) // 8 * 8, (B // 8) * 8)
            ft = F
        else:
            bt = B if B < 8 else 8
            ft = min(F, max(128, (budget // (bt * itemsize)) // 128 * 128))
        grid = (_cdiv(B, bt), _cdiv(F, ft))
        x_in = x.reshape(B, F)
        p_in = prompt.reshape(1, F)
        x_block = (bt, ft)
        p_block = (1, ft)
        in_specs = [
            pl.BlockSpec(x_block, lambda i, j: (i, j)),
            pl.BlockSpec(p_block, lambda i, j: (0, j)),
        ]
        out_spec = pl.BlockSpec(x_block, lambda i, j: (i, j))
        out_shape = jax.ShapeDtypeStruct((B, F), dt)

    # 2x double-buffered input + 2x output blocks + 2x prompt + headroom,
    # clamped to [32 MiB, 48 MiB] (<= 48 MiB so v7x keeps compiler scratch).
    vmem_limit = (4 * _vmem_bytes(x_block, itemsize)
                  + 2 * _vmem_bytes(p_block, itemsize)
                  + 4 * 1024 * 1024)
    vmem_limit = min(48 * 1024 * 1024, max(32 * 1024 * 1024, vmem_limit))

    out = pl.pallas_call(
        _add_prompt_kernel,
        out_shape=out_shape,
        grid=grid,
        in_specs=in_specs,
        out_specs=out_spec,
        input_output_aliases=aliases,
        compiler_params=pltpu.CompilerParams(
            dimension_semantics=("parallel", "parallel"),
            vmem_limit_bytes=vmem_limit,
        ),
    )(x_in, p_in)

    return out.reshape(B, C, H, W)


# ---------------------------------------------------------------------------
# Kernel 2: band-only, in-place (x aliased as output, frame-only DMA traffic)
# ---------------------------------------------------------------------------
def _band_kernel(x_hbm, ptop_ref, pbot_ref, plft_ref, prgt_ref, o_hbm,
                 tbuf, bbuf, lbuf, rbuf, sem, *, ps, base, H, W):
    b = pl.program_id(0)

    # Read the four frame rectangles of image b (x is aliased with the output,
    # so the untouched zero-prompt center is already correct in o_hbm).
    rd_t = pltpu.make_async_copy(x_hbm.at[b, :, pl.ds(0, ps), :], tbuf, sem.at[0])
    rd_b = pltpu.make_async_copy(x_hbm.at[b, :, pl.ds(H - ps, ps), :], bbuf, sem.at[1])
    rd_l = pltpu.make_async_copy(
        x_hbm.at[b, :, pl.ds(ps, base), pl.ds(0, ps)], lbuf, sem.at[2])
    rd_r = pltpu.make_async_copy(
        x_hbm.at[b, :, pl.ds(ps, base), pl.ds(W - ps, ps)], rbuf, sem.at[3])
    rd_t.start(); rd_b.start(); rd_l.start(); rd_r.start()

    rd_t.wait(); tbuf[...] = tbuf[...] + ptop_ref[...]
    rd_b.wait(); bbuf[...] = bbuf[...] + pbot_ref[...]
    rd_l.wait(); lbuf[...] = lbuf[...] + plft_ref[...]
    rd_r.wait(); rbuf[...] = rbuf[...] + prgt_ref[...]

    # Write the updated frame back to the same rectangles of the output.
    wr_t = pltpu.make_async_copy(tbuf, o_hbm.at[b, :, pl.ds(0, ps), :], sem.at[0])
    wr_b = pltpu.make_async_copy(bbuf, o_hbm.at[b, :, pl.ds(H - ps, ps), :], sem.at[1])
    wr_l = pltpu.make_async_copy(
        lbuf, o_hbm.at[b, :, pl.ds(ps, base), pl.ds(0, ps)], sem.at[2])
    wr_r = pltpu.make_async_copy(
        rbuf, o_hbm.at[b, :, pl.ds(ps, base), pl.ds(W - ps, ps)], sem.at[3])
    wr_t.start(); wr_b.start(); wr_l.start(); wr_r.start()
    wr_t.wait(); wr_b.wait(); wr_l.wait(); wr_r.wait()


def pad_prompter_forward_inplace(x, pad_up, pad_down, pad_left, pad_right):
    """Band-only variant. Caller should donate x (e.g. jit(..., donate_argnums=0))."""
    B, C, H, W = x.shape
    ps = pad_up.shape[2]
    base = H - 2 * ps
    assert H == W and base > 0
    dt = x.dtype

    p_top = pad_up[0].astype(dt)       # (C, ps, W)
    p_bot = pad_down[0].astype(dt)     # (C, ps, W)
    p_lft = pad_left[0].astype(dt)     # (C, base, ps)
    p_rgt = pad_right[0].astype(dt)    # (C, base, ps)

    kernel = functools.partial(_band_kernel, ps=ps, base=base, H=H, W=W)

    # TODO(synk): double-buffer the band DMAs across batch steps (P4) to
    # overlap reads of step i+1 with writebacks of step i on very large B.
    return pl.pallas_call(
        kernel,
        out_shape=jax.ShapeDtypeStruct((B, C, H, W), dt),
        grid=(B,),
        in_specs=[
            pl.BlockSpec(memory_space=pl.ANY),                # x (aliased)
            pl.BlockSpec((C, ps, W), lambda b: (0, 0, 0)),    # prompt top
            pl.BlockSpec((C, ps, W), lambda b: (0, 0, 0)),    # prompt bottom
            pl.BlockSpec((C, base, ps), lambda b: (0, 0, 0)), # prompt left
            pl.BlockSpec((C, base, ps), lambda b: (0, 0, 0)), # prompt right
        ],
        out_specs=pl.BlockSpec(memory_space=pl.ANY),
        scratch_shapes=[
            pltpu.VMEM((C, ps, W), dt),
            pltpu.VMEM((C, ps, W), dt),
            pltpu.VMEM((C, base, ps), dt),
            pltpu.VMEM((C, base, ps), dt),
            pltpu.SemaphoreType.DMA((4,)),
        ],
        input_output_aliases={0: 0},
        compiler_params=pltpu.CompilerParams(
            dimension_semantics=("parallel",),
            vmem_limit_bytes=32 * 1024 * 1024,
            has_side_effects=True,
        ),
    )(x, p_top, p_bot, p_lft, p_rgt)


# ---------------------------------------------------------------------------
# Reference + tests
# ---------------------------------------------------------------------------
def _reference_forward(x, pad_up, pad_down, pad_left, pad_right):
    B, C, H, W = x.shape
    ps = pad_up.shape[2]
    base = H - 2 * ps
    zeros = jnp.zeros((1, C, base, base), x.dtype)
    mid = jnp.concatenate([pad_left, zeros, pad_right], axis=3)
    prompt = jnp.concatenate([pad_up, mid, pad_down], axis=2)
    return x + prompt


def _make_inputs(image_size, prompt_size, B, C, key):
    base = image_size - 2 * prompt_size
    kx, ku, kd, kl, kr = jax.random.split(key, 5)
    x = jax.random.normal(kx, (B, C, image_size, image_size), jnp.float32)
    pu = jax.random.normal(ku, (1, C, prompt_size, image_size), jnp.float32)
    pdn = jax.random.normal(kd, (1, C, prompt_size, image_size), jnp.float32)
    plft = jax.random.normal(kl, (1, C, base, prompt_size), jnp.float32)
    prgt = jax.random.normal(kr, (1, C, base, prompt_size), jnp.float32)
    return x, pu, pdn, plft, prgt


if __name__ == "__main__":
    key = jax.random.PRNGKey(0)
    k1, k2, k3, k4 = jax.random.split(key, 4)

    # 1) Lane-dense streaming path (3*16*16 = 768 = 6*128).
    x, pu, pdn, plft, prgt = _make_inputs(16, 3, 2, 3, k1)
    out = jax.block_until_ready(pad_prompter_forward(x, pu, pdn, plft, prgt))
    ref = _reference_forward(x, pu, pdn, plft, prgt)
    assert out.shape == x.shape
    assert jnp.allclose(out, ref, atol=1e-6), "lane-dense path mismatch"

    # 2) (B, F) fallback path (3*20*20 = 1200, not a multiple of 128).
    x, pu, pdn, plft, prgt = _make_inputs(20, 3, 2, 3, k2)
    out = jax.block_until_ready(pad_prompter_forward(x, pu, pdn, plft, prgt))
    ref = _reference_forward(x, pu, pdn, plft, prgt)
    assert jnp.allclose(out, ref, atol=1e-6), "fallback path mismatch"

    # 3) Lane-dense path with a tiny budget to force R tiling (oversized-image
    #    code path) at small shapes: 3*32*32 = 3072 -> R=24, rt=8, grid=(2,3).
    x, pu, pdn, plft, prgt = _make_inputs(32, 3, 2, 3, k3)
    out = jax.block_until_ready(
        pad_prompter_forward(x, pu, pdn, plft, prgt, block_budget_bytes=4096))
    ref = _reference_forward(x, pu, pdn, plft, prgt)
    assert jnp.allclose(out, ref, atol=1e-6), "R-tiled path mismatch"

    # 4) Band-only in-place variant (x donated; frame-only HBM traffic).
    x, pu, pdn, plft, prgt = _make_inputs(16, 3, 2, 3, k4)
    ref = jax.block_until_ready(_reference_forward(x, pu, pdn, plft, prgt))
    inplace = jax.jit(pad_prompter_forward_inplace, donate_argnums=0)
    out = jax.block_until_ready(inplace(x, pu, pdn, plft, prgt))
    assert jnp.allclose(out, ref, atol=1e-6), "band-only in-place mismatch"

    print("KERNEL_OK")
</pallas_src>

<mosaic_0001>
module attributes {stable_mosaic.version = 11 : i64} {
  func.func @_add_prompt_kernel(%arg0: i32, %arg1: i32, %arg2: memref<1x6x128xf32, #tpu.memory_space<vmem>>, %arg3: memref<6x128xf32, #tpu.memory_space<vmem>>, %arg4: memref<1x6x128xf32, #tpu.memory_space<vmem>>) attributes {dimension_semantics = [#tpu.dimension_semantics<parallel>, #tpu.dimension_semantics<parallel>], iteration_bounds = array<i64: 2, 1>, scalar_prefetch = 0 : i64, scratch_operands = 0 : i64, tpu.core_type = #tpu.core_type<tc>, window_params = [{transform_indices = @transform_0, window_bounds = array<i64: 1, 6, 128>}, {transform_indices = @transform_1, window_bounds = array<i64: 6, 128>}, {transform_indices = @transform_2, window_bounds = array<i64: 1, 6, 128>}]} {
    %c0 = arith.constant 0 : index
    %c0_0 = arith.constant 0 : index
    %c0_1 = arith.constant 0 : index
    %0 = vector.load %arg2[%c0, %c0_0, %c0_1] : memref<1x6x128xf32, #tpu.memory_space<vmem>>, vector<1x6x128xf32>
    %c0_2 = arith.constant 0 : index
    %c0_3 = arith.constant 0 : index
    %1 = vector.load %arg3[%c0_2, %c0_3] : memref<6x128xf32, #tpu.memory_space<vmem>>, vector<6x128xf32>
    %2 = vector.shape_cast %1 : vector<6x128xf32> to vector<1x6x128xf32>
    %3 = arith.addf %0, %2 : vector<1x6x128xf32>
    %c0_4 = arith.constant 0 : index
    %c0_5 = arith.constant 0 : index
    %c0_6 = arith.constant 0 : index
    %4 = vector.load %arg4[%c0_4, %c0_5, %c0_6] : memref<1x6x128xf32, #tpu.memory_space<vmem>>, vector<1x6x128xf32>
    tpu.vector_store %arg4[%c0_4, %c0_5, %c0_6], %3 {strides = array<i32>} : memref<1x6x128xf32, #tpu.memory_space<vmem>>, vector<1x6x128xf32>,
    return
  }
  func.func @transform_0(%arg0: i32, %arg1: i32) -> (i32, i32, i32) {
    %c0_i32 = arith.constant 0 : i32
    %c0_i32_0 = arith.constant 0 : i32
    return %arg0, %arg1, %c0_i32 : i32, i32, i32
  }
  func.func @transform_1(%arg0: i32, %arg1: i32) -> (i32, i32) {
    %c0_i32 = arith.constant 0 : i32
    %c0_i32_0 = arith.constant 0 : i32
    return %arg1, %c0_i32 : i32, i32
  }
  func.func @transform_2(%arg0: i32, %arg1: i32) -> (i32, i32, i32) {
    %c0_i32 = arith.constant 0 : i32
    %c0_i32_0 = arith.constant 0 : i32
    return %arg0, %arg1, %c0_i32 : i32, i32, i32
  }
}

</mosaic_0001>

<bundles_post_ra>
// kernel: tpu_custom_call.1
= control target key start
LH: loop header
LB: loop body
LE: loop exit
PB: predicated region body
PF: predicated region fallthrough
CT: control target
= control target key end

     0   :  { %s354_s9 = smov 0   ;;  %s331_s10 = smov 0   ;;  %s368_s0 = inlined_call_operand.vmem [shape: f32[2,6,128], index: 0, kind: input, shape index: {}]   ;;  %s369_s1 = inlined_call_operand.vmem [shape: f32[6,128], index: 1, kind: input, shape index: {}]   ;;  %s370_s2 = inlined_call_operand.vmem [shape: f32[2,6,128], index: 2, kind: output, shape index: {}]  }
   0x1   :  { %s335_s11 = smov 0  }
   0x2 LB: > { %s24_s12 = sadd.s32 1, %s333_s10  ;;  %p286_p0 = scmp.ge.s32.totalorder %s337_s11, 1  ;;  %s337_s11 = sphi %s335_s11, %s12_s11   ;;  %s333_s10 = sphi %s331_s10, %s332_s10   ;;  %s329_s9 = sphi %s354_s9, %s371_s9  }
   0x3   : > { %p26_p1 = scmp.ge.s32.totalorder %s24_s12, 2  ;;  %p139_p2 = scmp.lt.s32.totalorder %s337_s11, 3 }
   0x5   : > { %s373_s12 = smov (%p26_p1, %s24_s12), 0  ;;  %p140_p3 = pnand %p286_p0, %p139_p2 }
   0x6   : > { %p169_p4 = scmp.lt.s32.totalorder (!%p140_p3), %s329_s9, 1 }
   0x7   : > { %143 = sbr.rel (%p140_p3) target bundleno = 19 (0x13), region = 28 }
   0xc   : > { %s375_s9 = smov (!%p169_p4, %s329_s9), 1  ;;  %v188_v0 = vld [vmem:[%s369_s1] sm:$0x3f] }
   0xd   : > { %s287_s13 = sshll.u32 %s375_s9, 3 }
   0xe   : > { %s175_s18 = scalar_lea.vmem %s368_s0, %s287_s13  ;;  %s186_s21 = scalar_lea.vmem %s370_s2, %s287_s13 }
   0xf   : > { %v187_v1 = vld [vmem:[%s175_s18] sm:$0x3f] }
  0x10   : > { %v189_v2 = vadd.f32 %v188_v0, %v187_v1 }
  0x12   : > { %190 = vst [vmem:[%s186_s21] sm:$0x3f] %v189_v2 }
  0x13 PF: > { %s12_s11 = sadd.s32 1, %s337_s11   ;;  %s371_s9 = smov %s333_s10 }
  0x14   : > { %p9_p5 = scmp.ge.s32.totalorder %s12_s11, 4   ;;  %s332_s10 = smov %s373_s12  }
  0x16   :  { %11 = sbr.rel (!%p9_p5) target bundleno = 2 (0x2), region = 61 }

</bundles_post_ra>
